<compile_context>
chip_gen: v7x
topology: tpu7x:2x2x1
jax: 0.10.0
libtpu: 0.0.40
codegen_flags: <defaults>
</compile_context>

<pallas_src>
import functools

import jax
import jax.numpy as jnp
from jax.experimental import pallas as pl
from jax.experimental.pallas import tpu as pltpu


# ----- fused-sincos constants (Cephes-style f32) -------------------------
_TWO_OVER_PI = 0.6366197723675814
# Cody-Waite split of pi/2 (3 terms, f32-exact leading parts).
_PIO2_1 = 1.5703125
_PIO2_2 = 4.837512969970703125e-04
_PIO2_3 = 7.549789948768648e-08
# sin(r) = r + r^3 * (S1 + z*(S2 + z*S3)),  z = r^2, |r| <= pi/4
_SIN_C1 = -1.6666654611e-1
_SIN_C2 = 8.3321608736e-3
_SIN_C3 = -1.9515295891e-4
# cos(r) = 1 - z/2 + z^2 * (C2 + z*(C3 + z*C4))
_COS_C2 = 4.166664568298827e-2
_COS_C3 = -1.388731625493765e-3
_COS_C4 = 2.443315711809948e-5


def time_embed_kernel(t_ref, freqs_ref, out_ref):
    # t_ref:     (TILE, 1)   timestep column (sublane-major -> pure VPU bcast)
    # freqs_ref: (1, half)   learned base frequencies (index_map is constant,
    #                        Mosaic keeps this window resident across steps)
    # out_ref:   (TILE, dim) lane-dense output slab, dim = 2 * half
    half = freqs_ref.shape[-1]
    t = t_ref[...]                       # (TILE, 1) f32
    f = freqs_ref[...]                   # (1, half) f32
    x = t * f                            # (TILE, half) phase, VPU broadcast

    # ---- fused sincos: shared range reduction + shared powers ----
    k = jnp.floor(x * _TWO_OVER_PI + 0.5)        # nearest multiple of pi/2
    r = x - k * _PIO2_1
    r = r - k * _PIO2_2
    r = r - k * _PIO2_3                           # |r| <= pi/4
    z = r * r                                     # shared by both polynomials

    sp = (_SIN_C3 * z + _SIN_C2) * z + _SIN_C1
    sr = sp * (z * r) + r                         # sin(r)

    cp = (_COS_C4 * z + _COS_C3) * z + _COS_C2
    cr = cp * (z * z) - 0.5 * z + 1.0             # cos(r)

    # Quadrant selection: q = k mod 4 (two's-complement & handles negative k).
    q = k.astype(jnp.int32)
    swap = (q & 1) == 1                           # q in {1,3}: swap magnitudes
    sin_neg = (q & 2) == 2                        # q in {2,3}: sin negative
    cos_neg = ((q + 1) & 2) == 2                  # q in {1,2}: cos negative

    s = jnp.where(swap, cr, sr)
    c = jnp.where(swap, sr, cr)
    s = jnp.where(sin_neg, -s, s)
    c = jnp.where(cos_neg, -c, c)

    # Split-half stores, lane-dense (half % 128 == 0 -> unmasked vst).
    out_ref[:, :half] = s.astype(out_ref.dtype)
    out_ref[:, half:] = c.astype(out_ref.dtype)


def _round_up(x, m):
    return (x + m - 1) // m * m


def _vmem_capacity_bytes():
    # Generation-aware VMEM size (v5e/v6e: 128 MiB, v7x: 64 MiB per TC).
    try:
        return int(pltpu.get_tpu_info().vmem_capacity_bytes)
    except Exception:
        return 64 * 1024 * 1024  # conservative fallback (v7x per-TC)


@functools.partial(jax.jit, static_argnames=("out_dtype",))
def _time_embedding_impl(t, base_freqs, out_dtype):
    B, S = t.shape
    half = base_freqs.shape[-1]
    dim = 2 * half
    N = B * S
    itemsize = jnp.dtype(out_dtype).itemsize
    # Sub-32-bit outputs pack 2 rows/sublane -> block rows must be 16-aligned.
    row_align = 8 if itemsize >= 4 else 16

    # ----- tile sizing: budget ALL per-step VMEM, not just the output -----
    vmem_cap = _vmem_capacity_bytes()
    out_row = dim * itemsize
    # per-row in flight: 2x output block (double-buffered) + 2x t column
    # ((8,128)-padded -> 512 B/row f32) + f32 phase/sin/cos temporaries.
    per_row = 2 * out_row + 2 * 512 + 4 * half * 4
    budget = int(vmem_cap * 0.6)                  # leave compiler headroom
    tile = max(row_align, (budget // per_row) // row_align * row_align)

    # Keep >= ~4 grid steps so the "parallel" axis shards across v7x's 2 TCs
    # (costs nothing on single-TC v5e/v6e).
    tile_for_steps = _round_up(pl.cdiv(N, 4), row_align)
    tile = max(row_align, min(tile, tile_for_steps))
    n_pad = _round_up(N, tile)

    # ----- operand prep -----
    t_col = t.reshape(N, 1).astype(jnp.float32)       # sublane-major column
    if n_pad != N:
        t_col = jnp.pad(t_col, ((0, n_pad - N), (0, 0)))
    freqs2d = base_freqs.reshape(1, half).astype(jnp.float32)

    # ----- honest VMEM limit derived from actual need -----
    freqs_bytes = 2 * 8 * half * 4                    # (1,half) pads to 8 sublanes
    vmem_need = tile * per_row + freqs_bytes + (2 << 20)
    vmem_limit = int(min(vmem_cap, max(vmem_need, 32 << 20)))

    cost = pl.CostEstimate(
        flops=8 * n_pad * dim,                        # fused-sincos poly work
        transcendentals=n_pad * dim,                  # sin+cos per element
        bytes_accessed=n_pad * 4 + half * 4 + n_pad * dim * itemsize,
    )

    out_flat = pl.pallas_call(
        time_embed_kernel,
        out_shape=jax.ShapeDtypeStruct((n_pad, dim), out_dtype),
        grid_spec=pltpu.PrefetchScalarGridSpec(
            num_scalar_prefetch=0,
            grid=(n_pad // tile,),
            in_specs=[
                pl.BlockSpec((tile, 1), lambda i: (i, 0)),   # timestep column
                pl.BlockSpec((1, half), lambda i: (0, 0)),   # shared freqs
            ],
            out_specs=pl.BlockSpec((tile, dim), lambda i: (i, 0)),
        ),
        compiler_params=pltpu.CompilerParams(
            dimension_semantics=("parallel",),
            vmem_limit_bytes=vmem_limit,
        ),
        cost_estimate=cost,
    )(t_col, freqs2d)

    return out_flat[:N].reshape(B, S, dim)


def time_embedding(t, base_freqs, *, out_dtype=jnp.float32):
    """t: (B, S) float, base_freqs: (1, 1, dim//2) -> (B, S, dim)."""
    half = base_freqs.shape[-1]
    dim = 2 * half
    # Lane-dense split-half stores require half % 128 == 0 (dim % 256 == 0).
    assert half % 128 == 0, (
        f"TimeEmbedding Pallas kernel requires dim % 256 == 0, got dim={dim}")
    return _time_embedding_impl(t, base_freqs, jnp.dtype(out_dtype))


if __name__ == "__main__":
    max_time = 10000.0
    key = jax.random.PRNGKey(0)

    def make_case(key, B, S, dim):
        k_freq, k_t = jax.random.split(key)
        base_freqs = (
            jax.random.normal(k_freq, (1, 1, dim // 2), dtype=jnp.float32)
            * (2.0 * jnp.pi / max_time)
        )
        t = jax.random.uniform(k_t, (B, S), dtype=jnp.float32,
                               minval=0.0, maxval=max_time)
        return t, base_freqs

    def reference(t, base_freqs):
        phase = base_freqs * t[:, :, None]
        return jnp.concatenate([jnp.sin(phase), jnp.cos(phase)], axis=2)

    # Case 1: small shape consistent with the module's forward (t is (B, S)).
    k1, k2 = jax.random.split(key)
    t1, f1 = make_case(k1, B=2, S=8, dim=256)
    out1 = jax.block_until_ready(time_embedding(t1, f1))
    ref1 = reference(t1, f1)
    assert out1.shape == (2, 8, 256), out1.shape
    assert jnp.allclose(out1, ref1, atol=2e-5, rtol=1e-5), "mismatch (case 1)"

    # Case 2: exercises multiple grid steps and the quadrant selection.
    t2, f2 = make_case(k2, B=4, S=64, dim=512)
    out2 = jax.block_until_ready(time_embedding(t2, f2))
    ref2 = reference(t2, f2)
    assert out2.shape == (4, 64, 512), out2.shape
    assert jnp.allclose(out2, ref2, atol=2e-5, rtol=1e-5), "mismatch (case 2)"

    print("KERNEL_OK")
</pallas_src>

<mosaic_0001>
module attributes {stable_mosaic.version = 11 : i64} {
  func.func @time_embed_kernel(%arg0: i32, %arg1: memref<8x1xf32, #tpu.memory_space<vmem>>, %arg2: memref<1x128xf32, #tpu.memory_space<vmem>>, %arg3: memref<8x256xf32, #tpu.memory_space<vmem>>) attributes {dimension_semantics = [#tpu.dimension_semantics<parallel>], iteration_bounds = array<i64: 2>, scalar_prefetch = 0 : i64, scratch_operands = 0 : i64, tpu.core_type = #tpu.core_type<tc>, window_params = [{transform_indices = @transform_0, window_bounds = array<i64: 8, 1>}, {pipeline_mode = #tpu.pipeline_mode<synchronous>, transform_indices = @transform_1, window_bounds = array<i64: 1, 128>}, {transform_indices = @transform_2, window_bounds = array<i64: 8, 256>}]} {
    %c0 = arith.constant 0 : index
    %c0_0 = arith.constant 0 : index
    %0 = vector.load %arg1[%c0, %c0_0] : memref<8x1xf32, #tpu.memory_space<vmem>>, vector<8x1xf32>
    %c0_1 = arith.constant 0 : index
    %c0_2 = arith.constant 0 : index
    %1 = vector.load %arg2[%c0_1, %c0_2] : memref<1x128xf32, #tpu.memory_space<vmem>>, vector<1x128xf32>
    %2 = vector.broadcast %0 : vector<8x1xf32> to vector<8x128xf32>
    %3 = vector.broadcast %1 : vector<1x128xf32> to vector<8x128xf32>
    %4 = arith.mulf %2, %3 : vector<8x128xf32>
    %cst = arith.constant 0.636619746 : f32
    %5 = vector.broadcast %cst : f32 to vector<8x128xf32>
    %6 = arith.mulf %4, %5 : vector<8x128xf32>
    %cst_3 = arith.constant 5.000000e-01 : f32
    %7 = vector.broadcast %cst_3 : f32 to vector<8x128xf32>
    %8 = arith.addf %6, %7 : vector<8x128xf32>
    %9 = math.floor %8 : vector<8x128xf32>
    %cst_4 = arith.constant 1.5703125 : f32
    %10 = vector.broadcast %cst_4 : f32 to vector<8x128xf32>
    %11 = arith.mulf %9, %10 : vector<8x128xf32>
    %12 = arith.subf %4, %11 : vector<8x128xf32>
    %cst_5 = arith.constant 4.83751297E-4 : f32
    %13 = vector.broadcast %cst_5 : f32 to vector<8x128xf32>
    %14 = arith.mulf %9, %13 : vector<8x128xf32>
    %15 = arith.subf %12, %14 : vector<8x128xf32>
    %cst_6 = arith.constant 7.549790e-08 : f32
    %16 = vector.broadcast %cst_6 : f32 to vector<8x128xf32>
    %17 = arith.mulf %9, %16 : vector<8x128xf32>
    %18 = arith.subf %15, %17 : vector<8x128xf32>
    %19 = arith.mulf %18, %18 : vector<8x128xf32>
    %cst_7 = arith.constant -1.95152956E-4 : f32
    %20 = vector.broadcast %cst_7 : f32 to vector<8x128xf32>
    %21 = arith.mulf %20, %19 : vector<8x128xf32>
    %cst_8 = arith.constant 0.00833216123 : f32
    %22 = vector.broadcast %cst_8 : f32 to vector<8x128xf32>
    %23 = arith.addf %21, %22 : vector<8x128xf32>
    %24 = arith.mulf %23, %19 : vector<8x128xf32>
    %cst_9 = arith.constant -0.166666552 : f32
    %25 = vector.broadcast %cst_9 : f32 to vector<8x128xf32>
    %26 = arith.addf %24, %25 : vector<8x128xf32>
    %27 = arith.mulf %19, %18 : vector<8x128xf32>
    %28 = arith.mulf %26, %27 : vector<8x128xf32>
    %29 = arith.addf %28, %18 : vector<8x128xf32>
    %cst_10 = arith.constant 2.44331568E-5 : f32
    %30 = vector.broadcast %cst_10 : f32 to vector<8x128xf32>
    %31 = arith.mulf %30, %19 : vector<8x128xf32>
    %cst_11 = arith.constant -0.00138873165 : f32
    %32 = vector.broadcast %cst_11 : f32 to vector<8x128xf32>
    %33 = arith.addf %31, %32 : vector<8x128xf32>
    %34 = arith.mulf %33, %19 : vector<8x128xf32>
    %cst_12 = arith.constant 0.0416666456 : f32
    %35 = vector.broadcast %cst_12 : f32 to vector<8x128xf32>
    %36 = arith.addf %34, %35 : vector<8x128xf32>
    %37 = arith.mulf %19, %19 : vector<8x128xf32>
    %38 = arith.mulf %36, %37 : vector<8x128xf32>
    %cst_13 = arith.constant 5.000000e-01 : f32
    %39 = vector.broadcast %cst_13 : f32 to vector<8x128xf32>
    %40 = arith.mulf %39, %19 : vector<8x128xf32>
    %41 = arith.subf %38, %40 : vector<8x128xf32>
    %cst_14 = arith.constant 1.000000e+00 : f32
    %42 = vector.broadcast %cst_14 : f32 to vector<8x128xf32>
    %43 = arith.addf %41, %42 : vector<8x128xf32>
    %44 = arith.fptosi %9 : vector<8x128xf32> to vector<8x128xi32>
    %c1_i32 = arith.constant 1 : i32
    %45 = vector.broadcast %c1_i32 : i32 to vector<8x128xi32>
    %46 = arith.andi %44, %45 : vector<8x128xi32>
    %c1_i32_15 = arith.constant 1 : i32
    %47 = vector.broadcast %c1_i32_15 : i32 to vector<8x128xi32>
    %48 = arith.cmpi eq, %46, %47 : vector<8x128xi32>
    %c2_i32 = arith.constant 2 : i32
    %49 = vector.broadcast %c2_i32 : i32 to vector<8x128xi32>
    %50 = arith.andi %44, %49 : vector<8x128xi32>
    %c2_i32_16 = arith.constant 2 : i32
    %51 = vector.broadcast %c2_i32_16 : i32 to vector<8x128xi32>
    %52 = arith.cmpi eq, %50, %51 : vector<8x128xi32>
    %c1_i32_17 = arith.constant 1 : i32
    %53 = vector.broadcast %c1_i32_17 : i32 to vector<8x128xi32>
    %54 = arith.addi %44, %53 : vector<8x128xi32>
    %c2_i32_18 = arith.constant 2 : i32
    %55 = vector.broadcast %c2_i32_18 : i32 to vector<8x128xi32>
    %56 = arith.andi %54, %55 : vector<8x128xi32>
    %c2_i32_19 = arith.constant 2 : i32
    %57 = vector.broadcast %c2_i32_19 : i32 to vector<8x128xi32>
    %58 = arith.cmpi eq, %56, %57 : vector<8x128xi32>
    %59 = arith.select %48, %43, %29 : vector<8x128xi1>, vector<8x128xf32>
    %60 = arith.select %48, %29, %43 : vector<8x128xi1>, vector<8x128xf32>
    %cst_20 = arith.constant 0.000000e+00 : f32
    %61 = vector.broadcast %cst_20 : f32 to vector<8x128xf32>
    %62 = arith.subf %61, %59 : vector<8x128xf32>
    %63 = arith.select %52, %62, %59 : vector<8x128xi1>, vector<8x128xf32>
    %cst_21 = arith.constant 0.000000e+00 : f32
    %64 = vector.broadcast %cst_21 : f32 to vector<8x128xf32>
    %65 = arith.subf %64, %60 : vector<8x128xf32>
    %66 = arith.select %58, %65, %60 : vector<8x128xi1>, vector<8x128xf32>
    %c0_22 = arith.constant 0 : index
    %c0_23 = arith.constant 0 : index
    %67 = vector.load %arg3[%c0_22, %c0_23] : memref<8x256xf32, #tpu.memory_space<vmem>>, vector<8x128xf32>
    tpu.vector_store %arg3[%c0_22, %c0_23], %63 {strides = array<i32>} : memref<8x256xf32, #tpu.memory_space<vmem>>, vector<8x128xf32>,
    %c0_24 = arith.constant 0 : index
    %c128 = arith.constant 128 : index
    %68 = vector.load %arg3[%c0_24, %c128] : memref<8x256xf32, #tpu.memory_space<vmem>>, vector<8x128xf32>
    tpu.vector_store %arg3[%c0_24, %c128], %66 {strides = array<i32>} : memref<8x256xf32, #tpu.memory_space<vmem>>, vector<8x128xf32>,
    return
  }
  func.func @transform_0(%arg0: i32) -> (i32, i32) {
    %c0_i32 = arith.constant 0 : i32
    %c0_i32_0 = arith.constant 0 : i32
    return %arg0, %c0_i32 : i32, i32
  }
  func.func @transform_1(%arg0: i32) -> (i32, i32) {
    %c0_i32 = arith.constant 0 : i32
    %c0_i32_0 = arith.constant 0 : i32
    %c0_i32_1 = arith.constant 0 : i32
    return %c0_i32, %c0_i32_0 : i32, i32
  }
  func.func @transform_2(%arg0: i32) -> (i32, i32) {
    %c0_i32 = arith.constant 0 : i32
    %c0_i32_0 = arith.constant 0 : i32
    return %arg0, %c0_i32 : i32, i32
  }
}

</mosaic_0001>

<bundles_post_ra>
// kernel: _time_embedding_impl.1
= control target key start
LH: loop header
LB: loop body
LE: loop exit
PB: predicated region body
PF: predicated region fallthrough
CT: control target
= control target key end

     0   :  { %7 = vsyncpa [#allocation3], 0  ;;  %s513_s0 = inlined_call_operand.vmem [shape: f32[16,1], index: 0, kind: input, shape index: {}]   ;;  %s514_s1 = inlined_call_operand.vmem [shape: f32[1,128], index: 1, kind: input, shape index: {}]   ;;  %s515_s2 = inlined_call_operand.hbm [shape: f32[16,256], index: 2, kind: output, shape index: {}]  }
   0x1   :  { %9 = vsyncpa [#allocation3 + $0x1], 0  ;;  %s406_s9 = smov 0   ;;  %s408_s10 = smov 0  }
   0x2   :  { %s410_s11 = smov 0   ;;  %s412_s12 = smov 0  }
   0x3 LB: > { %s427_s13 = sadd.s32 4294967295, %s387_s12   ;;  %s269_s14 = sadd.s32 4294967294, %s387_s12   ;;  %s387_s12 = sphi %s412_s12, %s521_s12   ;;  %s383_s11 = sphi %s410_s11, %s520_s11   ;;  %s379_s10 = sphi %s408_s10, %s519_s10   ;;  %s375_s9 = sphi %s406_s9, %s518_s9  }
   0x4   : > { %s431_s15 = sadd.s32 1, %s387_s12   ;;  %s69_s16 = sadd.s32 1, %s383_s11 }
   0x5   : > { %s66_s17 = ssub.s32 %s387_s12, %s431_s15  ;;  %p79_p0 = scmp.ne.s32.totalorder %s383_s11, %s379_s10 }
   0x6   : > { %p67_p1 = scmp.eq.s32.totalorder %s66_s17, 0  ;;  %p80_p2 = scmp.eq.s32.totalorder %s427_s13, 1 }
   0x7   : > { %p85_p3 = scmp.ne.s32.totalorder %s379_s10, %s375_s9  ;;  %p86_p4 = scmp.eq.s32.totalorder %s269_s14, 1 }
   0x8   : > { %s442_s18 = scalar_select %p67_p1, %s383_s11, %s69_s16  }
   0x9   : > { %p444_p5 = por %p80_p2, %p79_p0  ;;  %p448_p6 = por %p86_p4, %p85_p3 }
   0xa   : > { %p272_p7 = scmp.ge.s32.totalorder %s387_s12, 1  ;;  %p114_p8 = scmp.lt.s32.totalorder %s387_s12, 3 }
   0xc   : > { %p115_p9 = pnand %p272_p7, %p114_p8 }
   0xd   : > { %p135_p10 = scmp.lt.s32.totalorder (!%p115_p9), %s427_s13, 1  ;;  %v389_v0 = vmov (!%p115_p9), 0   ;;  %v275_v2 = vld [vmem:[%s514_s1] ss:$0 sm:$0xff] (!%p115_p9)  ;;  %s132_s28 = sand.u32 (!%p115_p9), 1, %s379_s10  }
   0xe   : > { %118 = sbr.rel (%p115_p9) target bundleno = 204 (0xcc), region = 28  ;;  %324 = vset.pattern.permute.xlu0 (!%p115_p9), %v389_v0  ;;  %s273_s29 = sshll.u32 (!%p115_p9), %s132_s28, 4 }
   0xf   : > { %s281_s30 = sshll.u32 (!%p115_p9), %s427_s13, 8  ;;  %s134_s3 = scalar_lea.vmem (!%p115_p9), [#allocation2], %s273_s29 }
  0x10   : > { %s210_s4 = sshll.u32 (!%p115_p9), %s134_s3, 4  ;;  %s469_s7 = scalar_lea.hbm (!%p115_p9), %s515_s2, %s281_s30  ;;  %s471_s4 = int_to_ptr.vmem [resolvable:$true] %s210_s4 }
  0x11   : > { %s196_s8 = scalar_lea.sflag (!%p115_p9), [#allocation3], %s132_s28  ;;  %s390_s14 = smov (!%p115_p9), [#allocation2]  }
  0x12   : > { %s329_s16 = sshll.u32 (!%p115_p9), %s390_s14, 4  ;;  %s330_s16 = int_to_ptr.vmem [resolvable:$false] %s329_s16 }
  0x13   : > { %s331_s17 = scalar_lea.vmem (!%p115_p9), %s330_s16, 512  ;;  %p332_p0 = scmp.lt.s32.totalorder (!%p115_p9), %s471_s4, %s330_s16 }
  0x15   : > { %s136_s21 = scalar_select %p135_p10, %s427_s13, 1 }
  0x16   : > { %s325_s13 = scalar_lea.vmem %s471_s4, 256 }
  0x17   : > { %s274_s22 = sshll.u32 %s136_s21, 3  ;;  %p326_p11 = scmp.ne.s32.totalorder %s471_s4, %s325_s13 }
  0x18   : > { %s138_s25 = scalar_lea.vmem %s513_s0, %s274_s22  ;;  %p333_p1 = scmp.lt.s32.totalorder %s331_s17, %s325_s13 }
  0x19   : > { %v139_v1 = vld [vmem:[%s138_s25] sm:$0xff]  ;;  %p327_p12 = pnand %p326_p11, %p444_p5 }
  0x1a   : > { %143 = vperm.xlu0 %324, %v139_v1   ;;  %p334_p2 = por %p333_p1, %p332_p0 }
  0x1b   : > { %p328_p13 = pneg %p327_p12 }
  0x1d   : > { %p335_p3 = pnand %p334_p2, %p328_p13 }
  0x99   : > { %v144_v3 = vpop.permute.xlu0 %143 }
  0x9a   : > { %v152_v4 = vmul.f32 %v275_v2, %v144_v3 }
  0x9c   : > { %v153_v5 = vmul.f32 0.63661975, %v152_v4 }
  0x9e   : > { %v154_v6 = vadd.f32 0.5, %v153_v5 }
  0xa0   : > { %v155_v7 = vfloor.f32 %v154_v6 }
  0xa2   : > { %v156_v8 = vmul.f32 1.5703125, %v155_v7  ;;  %v158_v10 = vmul.f32 0.0004837513, %v155_v7  ;;  %v160_v12 = vmul.f32 7.54979e-08, %v155_v7  ;;  %v282_v16 = vtrunc.f32 %v155_v7 }
  0xa4   : > { %v157_v9 = vsub.f32 %v152_v4, %v156_v8  ;;  %v283_v21 = vcvt.f32.s32 %v282_v16 }
  0xa6   : > { %v159_v11 = vsub.f32 %v157_v9, %v158_v10  ;;  %v184_v30 = vadd.s32 1, %v283_v21  ;;  %v180_v31 = vand.u32 1, %v283_v21  ;;  %v182_v35 = vand.u32 2, %v283_v21 }
  0xa8   : > { %v161_v13 = vsub.f32 %v159_v11, %v160_v12  ;;  %v185_v36 = vand.u32 2, %v184_v30  ;;  %vm181_vm0 = vcmp.eq.s32.totalorder %v180_v31, 1  ;;  %vm183_vm1 = vcmp.eq.s32.totalorder %v182_v35, 2 }
  0xaa   : > { %v162_v14 = vmul.f32 %v161_v13, %v161_v13  ;;  %vm186_vm2 = vcmp.eq.s32.totalorder %v185_v36, 2 }
  0xac   : > { %v163_v15 = vmul.f32 -0.00019515296, %v162_v14  ;;  %v170_v17 = vmul.f32 2.4433157e-05, %v162_v14  ;;  %v167_v24 = vmul.f32 %v162_v14, %v161_v13  ;;  %v174_v26 = vmul.f32 %v162_v14, %v162_v14 }
  0xad   : > { %v176_v29 = vmul.f32 0.5, %v162_v14 }
  0xae   : > { %v164_v18 = vadd.f32 0.008332161, %v163_v15  ;;  %v171_v19 = vadd.f32 -0.0013887316, %v170_v17 }
  0xb0   : > { %v165_v20 = vmul.f32 %v164_v18, %v162_v14  ;;  %v172_v22 = vmul.f32 %v171_v19, %v162_v14 }
  0xb2   : > { %v166_v23 = vadd.f32 -0.16666655, %v165_v20  ;;  %v173_v25 = vadd.f32 0.041666646, %v172_v22 }
  0xb4   : > { %v168_v27 = vmul.f32 %v167_v24, %v166_v23  ;;  %v175_v28 = vmul.f32 %v174_v26, %v173_v25 }
  0xb6   : > { %v177_v32 = vsub.f32 %v175_v28, %v176_v29  ;;  %v169_v33 = vadd.f32 %v168_v27, %v161_v13 }
  0xb8   : > { %v178_v34 = vadd.f32 1.0, %v177_v32 }
  0xba   : > { %v187_v37 = vsel %vm181_vm0, %v178_v34, %v169_v33  ;;  %v188_v38 = vsel %vm181_vm0, %v169_v33, %v178_v34 }
  0xbb   : > { %v189_v39 = vsub.f32 0.0, %v187_v37  ;;  %v191_v40 = vsub.f32 0.0, %v188_v38 }
  0xbd   : > { %v190_v41 = vsel %vm183_vm1, %v189_v39, %v187_v37  ;;  %v192_v42 = vsel %vm186_vm2, %v191_v40, %v188_v38 }
  0xbe   : > { %193 = vst [vmem:[%s134_s3] sm:$0xff] %v190_v41  ;;  %194 = vst [vmem:[%s134_s3 + $0x8] sm:$0xff] %v192_v42 }
  0xbf   : > { %338 = shalt.err (!%p335_p3)
}
  0xc0   : > { %s339_s21 = scalar_lea.hbm %s469_s7, 256  ;;  %s343_s24 = scalar_lea.hbm %s515_s2, 512 }
  0xc1   : > { %p340_p4 = scmp.ne.s32.totalorder %s469_s7, %s339_s21  ;;  %p344_p9 = scmp.lt.u32.totalorder %s469_s7, %s515_s2 }
  0xc2   : > { %p345_p10 = scmp.lt.u32.totalorder %s343_s24, %s339_s21  ;;  %p347_p12 = scmp.lt.u32.totalorder %s339_s21, %s469_s7 }
  0xc3   : > { %p341_p7 = pnand %p340_p4, %p444_p5 }
  0xc4   : > { %p346_p11 = por %p345_p10, %p344_p9 }
  0xc5   : > { %p342_p8 = pneg %p341_p7 }
  0xc6   : > { %p348_p13 = por %p347_p12, %p346_p11 }
  0xc8   : > { %p349_p0 = pnand %p348_p13, %p342_p8 }
  0xca   : > { %352 = shalt.err (!%p349_p0)
}
  0xcb   : > { %284 = dma.vmem_to_hbm [thread:$0]  (%p444_p5), %s471_s4, 256, %s469_s7, %s196_s8  }
  0xcc PF: > { %p290_p1 = scmp.ge.s32.totalorder %s387_s12, 2  ;;  %s222_s27 = sand.u32 1, %s375_s9  }
  0xcd   : > { %s223_s28 = scalar_lea.sflag [#allocation3], %s222_s27 }
  0xce   : > { %p287_p2 = pnand %p290_p1, %p448_p6 }
  0xd0   : > { %370 = dma.done.wait (!%p287_p2), %s223_s28, 256  }
  0xd1   : > { %372 = vsyncadd (!%p287_p2), %s223_s28, 4294967040  ;;  %p12_p3 = scmp.ge.s32.totalorder %s431_s15, 4   ;;  %s518_s9 = smov %s379_s10 }
  0xd2   : > { %s519_s10 = smov %s383_s11  ;;  %s520_s11 = smov %s442_s18 }
  0xd3   : > { %s521_s12 = smov %s431_s15  ;;  %14 = sbr.rel (!%p12_p3) target bundleno = 3 (0x3), region = 63 }
  0xda   :  { %228 = vsyncpa [#allocation3], 1 }
  0xdb   :  { %230 = vsyncpa [#allocation3 + $0x1], 1 }

</bundles_post_ra>
